<compile_context>
chip_gen: v7x
topology: tpu7x:2x2x1
jax: 0.10.0
libtpu: 0.0.40
codegen_flags: <defaults>
</compile_context>

<pallas_src>
import functools

import jax
import jax.numpy as jnp
from jax import lax
from jax.experimental import pallas as pl
from jax.experimental.pallas import tpu as pltpu


def _softmax_last(x):
    """Softmax over the last axis (exact, matches torch)."""
    m = jnp.max(x, axis=-1, keepdims=True)
    e = jnp.exp(x - m)
    s = jnp.sum(e, axis=-1, keepdims=True)
    return e * pl.reciprocal(s, approx=False)


# ----------------------------------------------------------------------------
# Kernel A: LayerNorm + packed (lane-padded) K|Q|V projection over (B*N, D)
# ----------------------------------------------------------------------------
def _norm_proj_kernel(x_ref, g_ref, be_ref, w_ref, b_ref, kqv_ref):
    x = x_ref[...]                                             # (T, D)
    mean = jnp.mean(x, axis=-1, keepdims=True)
    var = jnp.mean((x - mean) ** 2, axis=-1, keepdims=True)    # biased var (torch LN)
    xn = (x - mean) * lax.rsqrt(var + 1e-5)
    xn = xn * g_ref[...] + be_ref[...]                         # affine
    # single lane-packed projection [K | Q | V | zero-pad] (lane-dense store)
    kqv_ref[...] = (
        jnp.dot(xn, w_ref[...], preferred_element_type=jnp.float32) + b_ref[...])


# ----------------------------------------------------------------------------
# Kernel B: per-(batch, chunk) attention + residual + MixFFN + residual
# ----------------------------------------------------------------------------
def _attn_mixffn_kernel(kr_ref, qt_ref, vt_ref, x_ref,
                        wr_ref, br_ref,
                        w1_ref, b1_ref, wdw_ref, bdw_ref, w2_ref, b2_ref,
                        out_ref, *, H, W):
    n = H * W

    # ---- FuseEfficientAttention (head_count=1), rows of this chunk only ------
    # kr = keys.reshape(Kc,N); qt = queries.reshape(Kc,N)^T; vt = values.reshape(Vc,N)^T
    key = _softmax_last(kr_ref[0])                                   # (Kc, N)
    context = jnp.dot(key, vt_ref[0],
                      preferred_element_type=jnp.float32)            # (Kc, Vc)
    query = _softmax_last(qt_ref[0])                                 # (n, Kc)
    attended = jnp.dot(query, context,
                       preferred_element_type=jnp.float32)           # (n, Vc)
    attn = (jnp.dot(attended, wr_ref[...],
                    preferred_element_type=jnp.float32) + br_ref[...])   # (n, D)
    z = x_ref[0] + attn                                              # residual

    # ---- MixFFN: fc1 -> 3x3 depthwise conv -> exact GELU -> fc2 --------------
    h = (jnp.dot(z, w1_ref[...], preferred_element_type=jnp.float32)
         + b1_ref[...])                                              # (n, Dh)

    # (n,1) spatial indices / border masks (broadcast along lanes, tiny footprint)
    pos = lax.broadcasted_iota(jnp.int32, (n, 1), 0)
    row = pos // W
    col = pos % W

    # center tap (always valid, no roll) + conv bias
    acc = h * wdw_ref[pl.ds(4, 1), :] + bdw_ref[...]
    for ky in range(3):
        for kx in range(3):
            k = ky * 3 + kx
            if k == 4:
                continue
            dy, dx = ky - 1, kx - 1
            off = dy * W + dx
            valid = ((row + dy >= 0) & (row + dy < H) &
                     (col + dx >= 0) & (col + dx < W)).astype(jnp.float32)  # (n,1)
            # shifted[p] = h[p + off]; wrap-around rows are zeroed by the mask
            shifted = pltpu.roll(h, (-off) % n, 0)
            acc = acc + (shifted * valid) * wdw_ref[pl.ds(k, 1), :]

    inv_sqrt2 = jnp.float32(0.7071067811865476)
    g = 0.5 * acc * (1.0 + lax.erf(acc * inv_sqrt2))                 # exact GELU
    o = (jnp.dot(g, w2_ref[...], preferred_element_type=jnp.float32)
         + b2_ref[...])                                              # (n, D)
    out_ref[0] = z + o                                               # residual, streamed


# ----------------------------------------------------------------------------
# wrapper
# ----------------------------------------------------------------------------
def efficient_transformer_block_fuse_res(x, p, nfx1_len, nfx2_len, H1, W1, H2, W2):
    del nfx2_len, H2, W2  # unused by the reference forward
    B, N, D = x.shape
    Kc = p["wk"].shape[0]
    Vc = p["wv"].shape[0]
    Dh = p["w1"].shape[0]
    P = 2 * Kc + Vc
    P_pad = ((P + 127) // 128) * 128          # lane-dense packed-projection width
    f32 = jnp.float32
    row2d = lambda v: v.reshape(1, -1)

    # --- host-side (one-time) weight packing / pre-transposition -------------
    w_kqv_t = jnp.concatenate([p["wk"], p["wq"], p["wv"]], axis=0).T      # (D, P)
    w_kqv_t = jnp.pad(w_kqv_t, ((0, 0), (0, P_pad - P)))                  # (D, P_pad)
    b_kqv = jnp.pad(jnp.concatenate([p["bk"], p["bq"], p["bv"]]),
                    (0, P_pad - P)).reshape(1, P_pad)
    wr_t = p["wr"].T                                                       # (Vc, D)
    w1_t = p["w1"].T                                                       # (D, Dh)
    w2_t = p["w2"].T                                                       # (Dh, D)

    vmem_cap = 40 * 1024 * 1024   # fits v7x's 64 MiB physical with headroom; raises v5e default

    # --- Kernel A: row-tiled LayerNorm + packed KQV projection ---------------
    BN = B * N
    T = BN if BN <= 1024 else 1024            # partial last block handled by Pallas
    x2 = x.reshape(BN, D)
    kqv = pl.pallas_call(
        _norm_proj_kernel,
        out_shape=jax.ShapeDtypeStruct((BN, P_pad), f32),
        grid=(pl.cdiv(BN, T),),
        in_specs=[
            pl.BlockSpec((T, D), lambda i: (i, 0)),
            pl.BlockSpec((1, D), lambda i: (0, 0)),
            pl.BlockSpec((1, D), lambda i: (0, 0)),
            pl.BlockSpec((D, P_pad), lambda i: (0, 0)),
            pl.BlockSpec((1, P_pad), lambda i: (0, 0)),
        ],
        out_specs=pl.BlockSpec((T, P_pad), lambda i: (i, 0)),
        compiler_params=pltpu.CompilerParams(
            dimension_semantics=("parallel",),
            vmem_limit_bytes=vmem_cap),
    )(x2, row2d(p["ln1_g"]), row2d(p["ln1_b"]), w_kqv_t, b_kqv)

    # --- XLA glue: torch's `.reshape(b, channels, n)` row-major reinterpretation
    #     (NOT a transpose) + Q/V transpose so in-kernel dots are canonical.
    #     allow_input_fusion below lets XLA fuse these into kernel B's operands.
    # TODO(synk): a single-kernel fusion would need an in-kernel row-major re-view
    #             of a (N,Kc) ref as (Kc,N), which Pallas refs do not support.
    kqv = kqv[:, :P].reshape(B, N, P)
    keys_r = kqv[:, :, :Kc].reshape(B, Kc, N)
    q_t = kqv[:, :, Kc:2 * Kc].reshape(B, Kc, N).transpose(0, 2, 1)        # (B, N, Kc)
    v_t = kqv[:, :, 2 * Kc:].reshape(B, Vc, N).transpose(0, 2, 1)          # (B, N, Vc)

    # --- Kernel B: fused attention + residual + MixFFN, grid (B, num_chunks) --
    chunk = H1 * W1
    assert nfx1_len == chunk, "MixFFN chunk length must equal H1*W1"
    num_chunks = N // chunk
    assert num_chunks >= 1
    assert chunk % 8 == 0, "chunk length (H1*W1) must be a multiple of 8 for chunk-tiled grid"
    N_out = num_chunks * chunk                # torch drops any remainder tokens

    kern = functools.partial(_attn_mixffn_kernel, H=H1, W=W1)
    out = pl.pallas_call(
        kern,
        out_shape=jax.ShapeDtypeStruct((B, N_out, D), f32),
        grid=(B, num_chunks),
        in_specs=[
            pl.BlockSpec((1, Kc, N), lambda b, c: (b, 0, 0)),       # keys_r (full N)
            pl.BlockSpec((1, chunk, Kc), lambda b, c: (b, c, 0)),   # q^T   (chunk rows)
            pl.BlockSpec((1, N, Vc), lambda b, c: (b, 0, 0)),       # v^T   (full N)
            pl.BlockSpec((1, chunk, D), lambda b, c: (b, c, 0)),    # x     (chunk rows)
            pl.BlockSpec((Vc, D), lambda b, c: (0, 0)),
            pl.BlockSpec((1, D), lambda b, c: (0, 0)),
            pl.BlockSpec((D, Dh), lambda b, c: (0, 0)),
            pl.BlockSpec((1, Dh), lambda b, c: (0, 0)),
            pl.BlockSpec((9, Dh), lambda b, c: (0, 0)),
            pl.BlockSpec((1, Dh), lambda b, c: (0, 0)),
            pl.BlockSpec((Dh, D), lambda b, c: (0, 0)),
            pl.BlockSpec((1, D), lambda b, c: (0, 0)),
        ],
        out_specs=pl.BlockSpec((1, chunk, D), lambda b, c: (b, c, 0)),
        compiler_params=pltpu.CompilerParams(
            dimension_semantics=("parallel", "parallel"),
            vmem_limit_bytes=vmem_cap,
            allow_input_fusion=[True, True, True] + [False] * 9),
    )(keys_r, q_t, v_t, x, wr_t, row2d(p["br"]),
      w1_t, row2d(p["b1"]), p["wdw9"], row2d(p["bdw"]), w2_t, row2d(p["b2"]))
    return out


# ----------------------------------------------------------------------------
# deterministic parameter construction (shapes per the module __init__)
# ----------------------------------------------------------------------------
def init_params(key, in_dim, key_dim, value_dim):
    dh = in_dim * 4
    ks = jax.random.split(key, 16)

    def w(k, shape, scale=0.05):
        return scale * jax.random.normal(k, shape, jnp.float32)

    wdw = w(ks[10], (dh, 3, 3))                # torch Conv2d weight (Dh, 1, 3, 3) squeezed
    return dict(
        ln1_g=jnp.ones((in_dim,), jnp.float32),
        ln1_b=jnp.zeros((in_dim,), jnp.float32),
        wk=w(ks[0], (key_dim, in_dim)),   bk=w(ks[1], (key_dim,)),
        wq=w(ks[2], (key_dim, in_dim)),   bq=w(ks[3], (key_dim,)),
        wv=w(ks[4], (value_dim, in_dim)), bv=w(ks[5], (value_dim,)),
        wr=w(ks[6], (in_dim, value_dim)), br=w(ks[7], (in_dim,)),
        w1=w(ks[8], (dh, in_dim)),        b1=w(ks[9], (dh,)),
        wdw9=wdw.reshape(dh, 9).T,        # (9, Dh): [ky*3+kx, c] = wdw[c, ky, kx]
        bdw=w(ks[11], (dh,)),
        w2=w(ks[12], (in_dim, dh)),       b2=w(ks[13], (in_dim,)),
    )


if __name__ == "__main__":
    B, in_dim = 2, 32
    key_dim, value_dim = 16, 16
    H1 = W1 = H2 = W2 = 4
    nfx1_len = H1 * W1
    nfx2_len = H2 * W2
    N = nfx1_len + nfx2_len                    # x is (b, n1 + n2, d)

    x = jax.random.normal(jax.random.PRNGKey(0), (B, N, in_dim), jnp.float32)
    params = init_params(jax.random.PRNGKey(1), in_dim, key_dim, value_dim)

    out = efficient_transformer_block_fuse_res(
        x, params, nfx1_len, nfx2_len, H1, W1, H2, W2)
    out = jax.block_until_ready(out)
    assert out.shape == (B, N, in_dim)
    assert bool(jnp.all(jnp.isfinite(out)))
    print("KERNEL_OK")
</pallas_src>

<mosaic_0001>
module attributes {stable_mosaic.version = 11 : i64} {
  func.func @_norm_proj_kernel(%arg0: i32, %arg1: memref<64x32xf32, #tpu.memory_space<vmem>>, %arg2: memref<1x32xf32, #tpu.memory_space<vmem>>, %arg3: memref<1x32xf32, #tpu.memory_space<vmem>>, %arg4: memref<32x128xf32, #tpu.memory_space<vmem>>, %arg5: memref<1x128xf32, #tpu.memory_space<vmem>>, %arg6: memref<64x128xf32, #tpu.memory_space<vmem>>) attributes {dimension_semantics = [#tpu.dimension_semantics<parallel>], iteration_bounds = array<i64: 1>, scalar_prefetch = 0 : i64, scratch_operands = 0 : i64, tpu.core_type = #tpu.core_type<tc>, window_params = [{transform_indices = @transform_0, window_bounds = array<i64: 64, 32>}, {pipeline_mode = #tpu.pipeline_mode<synchronous>, transform_indices = @transform_1, window_bounds = array<i64: 1, 32>}, {pipeline_mode = #tpu.pipeline_mode<synchronous>, transform_indices = @transform_2, window_bounds = array<i64: 1, 32>}, {pipeline_mode = #tpu.pipeline_mode<synchronous>, transform_indices = @transform_3, window_bounds = array<i64: 32, 128>}, {pipeline_mode = #tpu.pipeline_mode<synchronous>, transform_indices = @transform_4, window_bounds = array<i64: 1, 128>}, {transform_indices = @transform_5, window_bounds = array<i64: 64, 128>}]} {
    %c0 = arith.constant 0 : index
    %c0_0 = arith.constant 0 : index
    %0 = vector.load %arg1[%c0, %c0_0] : memref<64x32xf32, #tpu.memory_space<vmem>>, vector<64x32xf32>
    %cst = arith.constant dense<0.000000e+00> : vector<64xf32>
    %1 = vector.multi_reduction <add>, %0, %cst [1] : vector<64x32xf32> to vector<64xf32>
    %2 = vector.shape_cast %1 : vector<64xf32> to vector<64x1xf32>
    %cst_1 = arith.constant 3.200000e+01 : f32
    %3 = vector.broadcast %cst_1 : f32 to vector<64x1xf32>
    %4 = arith.divf %2, %3 : vector<64x1xf32>
    %5 = vector.broadcast %4 : vector<64x1xf32> to vector<64x32xf32>
    %6 = arith.subf %0, %5 : vector<64x32xf32>
    %7 = arith.mulf %6, %6 : vector<64x32xf32>
    %cst_2 = arith.constant dense<0.000000e+00> : vector<64xf32>
    %8 = vector.multi_reduction <add>, %7, %cst_2 [1] : vector<64x32xf32> to vector<64xf32>
    %9 = vector.shape_cast %8 : vector<64xf32> to vector<64x1xf32>
    %cst_3 = arith.constant 3.200000e+01 : f32
    %10 = vector.broadcast %cst_3 : f32 to vector<64x1xf32>
    %11 = arith.divf %9, %10 : vector<64x1xf32>
    %12 = vector.broadcast %4 : vector<64x1xf32> to vector<64x32xf32>
    %13 = arith.subf %0, %12 : vector<64x32xf32>
    %cst_4 = arith.constant 9.99999974E-6 : f32
    %14 = vector.broadcast %cst_4 : f32 to vector<64x1xf32>
    %15 = arith.addf %11, %14 : vector<64x1xf32>
    %16 = math.rsqrt %15 : vector<64x1xf32>
    %17 = vector.broadcast %16 : vector<64x1xf32> to vector<64x32xf32>
    %18 = arith.mulf %13, %17 : vector<64x32xf32>
    %c0_5 = arith.constant 0 : index
    %c0_6 = arith.constant 0 : index
    %19 = vector.load %arg2[%c0_5, %c0_6] : memref<1x32xf32, #tpu.memory_space<vmem>>, vector<1x32xf32>
    %20 = vector.broadcast %19 : vector<1x32xf32> to vector<64x32xf32>
    %21 = arith.mulf %18, %20 : vector<64x32xf32>
    %c0_7 = arith.constant 0 : index
    %c0_8 = arith.constant 0 : index
    %22 = vector.load %arg3[%c0_7, %c0_8] : memref<1x32xf32, #tpu.memory_space<vmem>>, vector<1x32xf32>
    %23 = vector.broadcast %22 : vector<1x32xf32> to vector<64x32xf32>
    %24 = arith.addf %21, %23 : vector<64x32xf32>
    %c0_9 = arith.constant 0 : index
    %c0_10 = arith.constant 0 : index
    %25 = vector.load %arg4[%c0_9, %c0_10] : memref<32x128xf32, #tpu.memory_space<vmem>>, vector<32x128xf32>
    %cst_11 = arith.constant dense<0.000000e+00> : vector<64x128xf32>
    %26 = tpu.matmul %24, %25, %cst_11 {dimension_numbers = #tpu.dot_dimension_numbers<[1], [0], [0], [1], [0, 0, 1, 1], [], []>} : vector<64x32xf32>, vector<32x128xf32>, vector<64x128xf32> -> vector<64x128xf32>
    %c0_12 = arith.constant 0 : index
    %c0_13 = arith.constant 0 : index
    %27 = vector.load %arg5[%c0_12, %c0_13] : memref<1x128xf32, #tpu.memory_space<vmem>>, vector<1x128xf32>
    %28 = vector.broadcast %27 : vector<1x128xf32> to vector<64x128xf32>
    %29 = arith.addf %26, %28 : vector<64x128xf32>
    %c0_14 = arith.constant 0 : index
    %c0_15 = arith.constant 0 : index
    %30 = vector.load %arg6[%c0_14, %c0_15] : memref<64x128xf32, #tpu.memory_space<vmem>>, vector<64x128xf32>
    tpu.vector_store %arg6[%c0_14, %c0_15], %29 {strides = array<i32>} : memref<64x128xf32, #tpu.memory_space<vmem>>, vector<64x128xf32>,
    return
  }
  func.func @transform_0(%arg0: i32) -> (i32, i32) {
    %c0_i32 = arith.constant 0 : i32
    %c0_i32_0 = arith.constant 0 : i32
    return %arg0, %c0_i32 : i32, i32
  }
  func.func @transform_1(%arg0: i32) -> (i32, i32) {
    %c0_i32 = arith.constant 0 : i32
    %c0_i32_0 = arith.constant 0 : i32
    %c0_i32_1 = arith.constant 0 : i32
    return %c0_i32, %c0_i32_0 : i32, i32
  }
  func.func @transform_2(%arg0: i32) -> (i32, i32) {
    %c0_i32 = arith.constant 0 : i32
    %c0_i32_0 = arith.constant 0 : i32
    %c0_i32_1 = arith.constant 0 : i32
    return %c0_i32, %c0_i32_0 : i32, i32
  }
  func.func @transform_3(%arg0: i32) -> (i32, i32) {
    %c0_i32 = arith.constant 0 : i32
    %c0_i32_0 = arith.constant 0 : i32
    %c0_i32_1 = arith.constant 0 : i32
    return %c0_i32, %c0_i32_0 : i32, i32
  }
  func.func @transform_4(%arg0: i32) -> (i32, i32) {
    %c0_i32 = arith.constant 0 : i32
    %c0_i32_0 = arith.constant 0 : i32
    %c0_i32_1 = arith.constant 0 : i32
    return %c0_i32, %c0_i32_0 : i32, i32
  }
  func.func @transform_5(%arg0: i32) -> (i32, i32) {
    %c0_i32 = arith.constant 0 : i32
    %c0_i32_0 = arith.constant 0 : i32
    return %arg0, %c0_i32 : i32, i32
  }
}

</mosaic_0001>

<bundles_post_ra>
// kernel: tpu_custom_call.1
= control target key start
LH: loop header
LB: loop body
LE: loop exit
PB: predicated region body
PF: predicated region fallthrough
CT: control target
= control target key end

     0   :  { %vm29_vm0 = vcmask 261120   ;;  %s581_s0 = inlined_call_operand.vmem [shape: f32[64,32], index: 0, kind: input, shape index: {}]   ;;  %s582_s1 = inlined_call_operand.vmem [shape: f32[1,32], index: 1, kind: input, shape index: {}]   ;;  %s583_s2 = inlined_call_operand.vmem [shape: f32[1,32], index: 2, kind: input, shape index: {}]   ;;  %s584_s3 = inlined_call_operand.vmem [shape: f32[32,128], index: 3, kind: input, shape index: {}]   ;;  %s585_s4 = inlined_call_operand.vmem [shape: f32[1,128], index: 4, kind: input, shape index: {}]   ;;  %s586_s5 = inlined_call_operand.hbm [shape: f32[64,128], index: 5, kind: output, shape index: {}]  }
   0x1   :  { %v21_v0 = vld [vmem:[%s581_s0] sm:$0xff]  ;;  %v22_v1 = vld [vmem:[%s581_s0 + $0x8] sm:$0xff] }
   0x2   :  { %v25_v2 = vld [vmem:[%s581_s0 + $0x20] sm:$0xff]  ;;  %v30_v3 = vsel %vm29_vm0, %v21_v0, 0.0  ;;  %v33_v4 = vsel %vm29_vm0, %v22_v1, 0.0  ;;  %v26_v5 = vld [vmem:[%s581_s0 + $0x28] sm:$0xff] }
   0x3   :  { %31 = vadd.xlane.f32.xlu0 %v30_v3  ;;  %34 = vadd.xlane.f32.xlu1 %v33_v4  ;;  %v42_v6 = vsel %vm29_vm0, %v25_v2, 0.0  ;;  %v45_v7 = vsel %vm29_vm0, %v26_v5, 0.0 }
   0x4   :  { %10 = vsyncpa [#allocation3], 0  ;;  %v23_v8 = vld [vmem:[%s581_s0 + $0x10] sm:$0xff]  ;;  %v24_v12 = vld [vmem:[%s581_s0 + $0x18] sm:$0xff]  ;;  %s427_s19 = smov [#allocation2]  }
   0x5   :  { %v27_v9 = vld [vmem:[%s581_s0 + $0x30] sm:$0xff]  ;;  %v36_v10 = vsel %vm29_vm0, %v23_v8, 0.0  ;;  %v28_v13 = vld [vmem:[%s581_s0 + $0x38] sm:$0xff]  ;;  %v39_v14 = vsel %vm29_vm0, %v24_v12, 0.0  ;;  %v165_v56 = vld [vmem:[%s584_s3] sm:$0xff]  ;;  %s318_s20 = sshll.u32 %s427_s19, 4  ;;  %s319_s20 = int_to_ptr.vmem [resolvable:$true] %s318_s20 }
   0x6   :  { %v48_v11 = vsel %vm29_vm0, %v27_v9, 0.0  ;;  %v51_v15 = vsel %vm29_vm0, %v28_v13, 0.0  ;;  %v166_v57 = vld [vmem:[%s584_s3 + $0x8] sm:$0xff]  ;;  %v167_v59 = vld [vmem:[%s584_s3 + $0x10] sm:$0xff]  ;;  %v168_v60 = vld [vmem:[%s584_s3 + $0x18] sm:$0xff]  ;;  %p408_p1 = scmp.lt.s32.totalorder %s319_s20, %s319_s20 }
   0x7   :  { %43 = vadd.xlane.f32.xlu0 %v42_v6  ;;  %46 = vadd.xlane.f32.xlu1 %v45_v7  ;;  %v372_v58 = vpack.c.bf16 %v166_v57, %v165_v56  ;;  %v376_v61 = vpack.c.bf16 %v168_v60, %v167_v59 }
   0x9   :  { %373 = vmatprep.subr.bf16.mxu0 %v372_v58  ;;  %380 = vmatprep.subr.bf16.mxu1 %v372_v58 }
   0xa   :  { %375 = vmatpush3.bf16.msra.mxu0 %v372_v58  ;;  %382 = vmatpush3.bf16.msra.mxu1 %v372_v58 }
   0xb   :  { %37 = vadd.xlane.f32.xlu0 %v36_v10  ;;  %49 = vadd.xlane.f32.xlu1 %v48_v11 }
   0xc   :  { %377 = vmatprep.subr.bf16.mxu0 %v376_v61  ;;  %381 = vmatprep.subr.bf16.mxu1 %v376_v61 }
   0xe   :  { %379 = vmatpush3.bf16.msra.mxu0 %v376_v61  ;;  %383 = vmatpush3.bf16.msra.mxu1 %v376_v61 }
   0xf   :  { %40 = vadd.xlane.f32.xlu0 %v39_v14  ;;  %52 = vadd.xlane.f32.xlu1 %v51_v15 }
  0x90   :  { %v32_v16 = vpop.xlane.xlu0 %31  ;;  %v35_v17 = vpop.xlane.xlu1 %34 }
  0x91   :  { %v55_v18 = vmul.f32 0.03125, %v32_v16  ;;  %v56_v19 = vmul.f32 0.03125, %v35_v17 }
  0x93   :  { %v492_v20 = vsub.f32 %v21_v0, %v55_v18  ;;  %v494_v21 = vsub.f32 %v22_v1, %v56_v19 }
  0x94   :  { %v44_v22 = vpop.xlane.xlu0 %43  ;;  %v47_v23 = vpop.xlane.xlu1 %46 }
  0x95   :  { %v59_v24 = vmul.f32 0.03125, %v44_v22  ;;  %v60_v25 = vmul.f32 0.03125, %v47_v23  ;;  %v71_v26 = vmul.f32 %v492_v20, %v492_v20  ;;  %v72_v27 = vmul.f32 %v494_v21, %v494_v21  ;;  %v329_v22 = vld [vmem:[%s582_s1] ss:$0 sm:$0xff] }
  0x97   :  { %v500_v28 = vsub.f32 %v25_v2, %v59_v24  ;;  %v502_v29 = vsub.f32 %v26_v5, %v60_v25  ;;  %v79_v30 = vsel %vm29_vm0, %v71_v26, 0.0  ;;  %v82_v33 = vsel %vm29_vm0, %v72_v27, 0.0  ;;  %v330_v26 = vld [vmem:[%s583_s2] ss:$0 sm:$0xff] }
  0x98   :  { %80 = vadd.xlane.f32.xlu0 %v79_v30  ;;  %v38_v31 = vpop.xlane.xlu0 %37  ;;  %v50_v32 = vpop.xlane.xlu1 %49 }
  0x99   :  { %v57_v34 = vmul.f32 0.03125, %v38_v31  ;;  %v61_v35 = vmul.f32 0.03125, %v50_v32  ;;  %v75_v36 = vmul.f32 %v500_v28, %v500_v28  ;;  %v76_v37 = vmul.f32 %v502_v29, %v502_v29 }
  0x9b   :  { %v510_v38 = vsub.f32 %v23_v8, %v57_v34  ;;  %v512_v39 = vsub.f32 %v27_v9, %v61_v35  ;;  %v91_v40 = vsel %vm29_vm0, %v75_v36, 0.0  ;;  %v94_v43 = vsel %vm29_vm0, %v76_v37, 0.0 }
  0x9c   :  { %83 = vadd.xlane.f32.xlu0 %v82_v33  ;;  %92 = vadd.xlane.f32.xlu1 %v91_v40  ;;  %v41_v41 = vpop.xlane.xlu0 %40  ;;  %v53_v42 = vpop.xlane.xlu1 %52 }
  0x9d   :  { %v58_v44 = vmul.f32 0.03125, %v41_v41  ;;  %v62_v45 = vmul.f32 0.03125, %v53_v42  ;;  %v73_v46 = vmul.f32 %v510_v38, %v510_v38  ;;  %v77_v47 = vmul.f32 %v512_v39, %v512_v39 }
  0x9f   :  { %v520_v48 = vsub.f32 %v24_v12, %v58_v44  ;;  %v522_v49 = vsub.f32 %v28_v13, %v62_v45  ;;  %v85_v50 = vsel %vm29_vm0, %v73_v46, 0.0  ;;  %v97_v51 = vsel %vm29_vm0, %v77_v47, 0.0 }
  0xa0   :  { %95 = vadd.xlane.f32.xlu1 %v94_v43  ;;  %86 = vadd.xlane.f32.xlu0 %v85_v50 }
  0xa1   :  { %v74_v52 = vmul.f32 %v520_v48, %v520_v48  ;;  %v78_v53 = vmul.f32 %v522_v49, %v522_v49 }
  0xa3   :  { %v88_v54 = vsel %vm29_vm0, %v74_v52, 0.0  ;;  %v100_v55 = vsel %vm29_vm0, %v78_v53, 0.0 }
  0xa4   :  { %98 = vadd.xlane.f32.xlu1 %v97_v51  ;;  %89 = vadd.xlane.f32.xlu0 %v88_v54 }
  0xa8   :  { %101 = vadd.xlane.f32.xlu1 %v100_v55 }
 0x125   :  { %v81_v62 = vpop.xlane.xlu0 %80 }
 0x126   :  { %v103_v63 = vmul.f32 0.03125, %v81_v62 }
 0x128   :  { %v111_v0 = vadd.f32 1e-05, %v103_v63 }
 0x129   :  { %v93_v1 = vpop.xlane.xlu1 %92  ;;  %v84_v2 = vpop.xlane.xlu0 %83 }
 0x12a   :  { %387 = vrsqrt.f32 %v111_v0  ;;  %v107_v3 = vmul.f32 0.03125, %v93_v1  ;;  %v104_v4 = vmul.f32 0.03125, %v84_v2 }
 0x12c   :  { %v115_v5 = vadd.f32 1e-05, %v107_v3  ;;  %v112_v6 = vadd.f32 1e-05, %v104_v4 }
 0x12d   :  { %v96_v7 = vpop.xlane.xlu1 %95  ;;  %v87_v8 = vpop.xlane.xlu0 %86 }
 0x12e   :  { %389 = vrsqrt.f32 %v115_v5  ;;  %v108_v9 = vmul.f32 0.03125, %v96_v7  ;;  %v105_v10 = vmul.f32 0.03125, %v87_v8 }
 0x12f   :  { %391 = vrsqrt.f32 %v112_v6 }
 0x130   :  { %v116_v11 = vadd.f32 1e-05, %v108_v9  ;;  %v113_v12 = vadd.f32 1e-05, %v105_v10 }
 0x131   :  { %v99_v13 = vpop.xlane.xlu1 %98  ;;  %v90_v14 = vpop.xlane.xlu0 %89 }
 0x132   :  { %393 = vrsqrt.f32 %v116_v11  ;;  %v109_v15 = vmul.f32 0.03125, %v99_v13  ;;  %v106_v16 = vmul.f32 0.03125, %v90_v14 }
 0x133   :  { %395 = vrsqrt.f32 %v113_v12 }
 0x134   :  { %v388_v17 = vpop.eup %387  ;;  %v117_v18 = vadd.f32 1e-05, %v109_v15  ;;  %v114_v19 = vadd.f32 1e-05, %v106_v16 }
 0x135   :  { %v102_v23 = vpop.xlane.xlu1 %101  ;;  %v127_v24 = vmul.f32 %v388_v17, %v492_v20 }
 0x136   :  { %397 = vrsqrt.f32 %v117_v18  ;;  %v110_v25 = vmul.f32 0.03125, %v102_v23 }
 0x137   :  { %399 = vrsqrt.f32 %v114_v19  ;;  %v142_v27 = vmul.f32 %v329_v22, %v127_v24 }
 0x138   :  { %v390_v30 = vpop.eup %389  ;;  %v118_v31 = vadd.f32 1e-05, %v110_v25 }
 0x139   :  { %v392_v32 = vpop.eup %391  ;;  %v157_v33 = vadd.f32 %v330_v26, %v142_v27  ;;  %v131_v34 = vmul.f32 %v390_v30, %v500_v28 }
 0x13a   :  { %401 = vrsqrt.f32 %v118_v31  ;;  %v128_v35 = vmul.f32 %v392_v32, %v494_v21 }
 0x13b   :  { %360 = vmatprep.mubr.msk.f32.mxu0 %vm29_vm0, %v157_v33  ;;  %v146_v20 = vmul.f32 %v329_v22, %v131_v34 }
 0x13c   :  { %v394_v36 = vpop.eup %393  ;;  %v143_v37 = vmul.f32 %v329_v22, %v128_v35 }
 0x13d   :  { %v396_v40 = vpop.eup %395  ;;  %v161_v41 = vadd.f32 %v330_v26, %v146_v20  ;;  %v132_v42 = vmul.f32 %v394_v36, %v502_v29 }
 0x13e   :  { %v158_v43 = vadd.f32 %v330_v26, %v143_v37  ;;  %v129_v44 = vmul.f32 %v396_v40, %v510_v38 }
 0x13f   :  { %366 = vmatprep.mubr.msk.f32.mxu1 %vm29_vm0, %v161_v41  ;;  %v147_v45 = vmul.f32 %v329_v22, %v132_v42 }
 0x140   :  { %v398_v46 = vpop.eup %397  ;;  %361 = vmatmul.mubr.msk.f32.vlgmr.msra.gmra.mrb[0].mxu0 %vm29_vm0, %v158_v43  ;;  %v144_v28 = vmul.f32 %v329_v22, %v129_v44 }
 0x141   :  { %v400_v21 = vpop.eup %399  ;;  %v162_v47 = vadd.f32 %v330_v26, %v147_v45  ;;  %v133_v50 = vmul.f32 %v398_v46, %v512_v39 }
 0x142   :  { %v159_v51 = vadd.f32 %v330_v26, %v144_v28  ;;  %v130_v52 = vmul.f32 %v400_v21, %v520_v48  ;;  %v331_v48 = vld [vmem:[%s585_s4] ss:$0 sm:$0xff]  ;;  %s403_s4 = scalar_lea.vmem %s319_s20, 1024 }
 0x143   :  { %367 = vmatmul.mubr.msk.f32.vlgmr.msra.gmra.mrb[0].mxu1 %vm29_vm0, %v162_v47  ;;  %v148_v29 = vmul.f32 %v329_v22, %v133_v50  ;;  %p404_p0 = scmp.ne.s32.totalorder %s319_s20, %s403_s4  ;;  %p409_p2 = scmp.lt.s32.totalorder %s403_s4, %s403_s4 }
 0x144   :  { %v402_v53 = vpop.eup %401  ;;  %363 = vmatprep.mubr.msk.f32.mxu0 %vm29_vm0, %v159_v51  ;;  %v145_v38 = vmul.f32 %v329_v22, %v130_v52 }
 0x145   :  { %v163_v54 = vadd.f32 %v330_v26, %v148_v29  ;;  %v134_v55 = vmul.f32 %v402_v53, %v522_v49  ;;  %p410_p3 = por %p409_p2, %p408_p1 }
 0x146   :  { %v160_v56 = vadd.f32 %v330_v26, %v145_v38 }
 0x147   :  { %369 = vmatprep.mubr.msk.f32.mxu1 %vm29_vm0, %v163_v54  ;;  %v149_v57 = vmul.f32 %v329_v22, %v134_v55  ;;  %p411_p4 = pnand %p410_p3, %p404_p0 }
 0x148   :  { %364 = vmatmul.mubr.msk.f32.gmra.mrb[2].mxu0 %vm29_vm0, %v160_v56 }
 0x149   :  { %v164_v39 = vadd.f32 %v330_v26, %v149_v57 }
 0x14b   :  { %370 = vmatmul.mubr.msk.f32.gmra.mrb[2].mxu1 %vm29_vm0, %v164_v39 }
 0x213   :  { %v362_v58 = vpop.f32.mrb[0].mxu0 }
 0x214   :  { %v272_v59 = vadd.f32 %v362_v58, %v331_v48  ;;  %v266_v60 = vpop.f32.mrb[1].mxu0 }
 0x215   :  { %v267_v61 = vadd.f32 %v331_v48, %v266_v60 }
 0x216   :  { %306 = vst [vmem:[#allocation2 + $0x8] sm:$0xff] %v272_v59  ;;  %v368_v62 = vpop.f32.mrb[0].mxu1 }
 0x217   :  { %305 = vst [vmem:[#allocation2] sm:$0xff] %v267_v61  ;;  %v292_v49 = vadd.f32 %v368_v62, %v331_v48  ;;  %v286_v63 = vpop.f32.mrb[1].mxu1 }
 0x218   :  { %v287_v0 = vadd.f32 %v331_v48, %v286_v63 }
 0x219   :  { %310 = vst [vmem:[#allocation2 + $0x28] sm:$0xff] %v292_v49 }
 0x21a   :  { %309 = vst [vmem:[#allocation2 + $0x20] sm:$0xff] %v287_v0 }
 0x21b   :  { %v365_v1 = vpop.f32.mrb[2].mxu0 }
 0x21c   :  { %v282_v2 = vadd.f32 %v365_v1, %v331_v48  ;;  %v276_v3 = vpop.f32.mrb[3].mxu0 }
 0x21d   :  { %v277_v4 = vadd.f32 %v331_v48, %v276_v3 }
 0x21e   :  { %308 = vst [vmem:[#allocation2 + $0x18] sm:$0xff] %v282_v2  ;;  %v371_v5 = vpop.f32.mrb[2].mxu1 }
 0x21f   :  { %307 = vst [vmem:[#allocation2 + $0x10] sm:$0xff] %v277_v4  ;;  %v302_v6 = vadd.f32 %v371_v5, %v331_v48  ;;  %v296_v7 = vpop.f32.mrb[3].mxu1 }
 0x220   :  { %v297_v8 = vadd.f32 %v331_v48, %v296_v7 }
 0x221   :  { %312 = vst [vmem:[#allocation2 + $0x38] sm:$0xff] %v302_v6 }
 0x222   :  { %311 = vst [vmem:[#allocation2 + $0x30] sm:$0xff] %v297_v8 }
 0x223   :  { %414 = shalt.err (!%p411_p4)
}
 0x224   :  { %s415_s23 = scalar_lea.hbm %s586_s5, 1024 }
 0x225   :  { %p416_p5 = scmp.ne.s32.totalorder %s586_s5, %s415_s23  ;;  %p419_p6 = scmp.lt.u32.totalorder %s415_s23, %s586_s5 }
 0x227   :  { %p421_p7 = pnand %p419_p6, %p416_p5 }
 0x229   :  { %424 = shalt.err (!%p421_p7)
}
 0x22a   :  { %s428_s28 = smov 128   ;;  %s429_s29 = smov 8  }
 0x22b   :  { %324 = dma.vmem_to_hbm [thread:$0]  %s319_s20, 1024, %s586_s5, [#allocation3], %s428_s28, %s428_s28, %s429_s29  }
 0x22c   :  { %425 = dma.done.wait [#allocation3], 1024  }
 0x22d   :  { %426 = vsyncadd [#allocation3], 4294966272 }
 0x22e   :  { %328 = vsyncpa [#allocation3], 1 }

</bundles_post_ra>
